<compile_context>
chip_gen: v6e
topology: v6e:2x2x1
jax: 0.10.0
libtpu: 0.0.40
codegen_flags: <defaults>
</compile_context>

<pallas_src>
import jax
import jax.numpy as jnp
from jax.experimental import pallas as pl
from jax.experimental.pallas import tpu as pltpu

_NEG_LARGE = -1e30  # finite stand-in for -inf (exp underflows to exactly 0, no overflow risk)


def _bilinear_vecseq_attn_kernel(x_ref, wy_ref, mask_ref, alpha_ref, wx_ref):
    x = x_ref[...].astype(jnp.float32)        # (Bt, L, H1)
    wy = wy_ref[...].astype(jnp.float32)      # (Bt, 1, H1)
    mask = mask_ref[...][:, 0, :]             # (Bt, L) int32, nonzero = padding

    # xWy_i = <x_i, Wy>  -> (Bt, L)  (broadcast-multiply + lane reduction over H1)
    xwy = jnp.sum(x * wy, axis=-1)

    # masked_fill: large finite negative instead of -inf (avoids NaN for all-pad rows)
    xwy = jnp.where(mask != 0, _NEG_LARGE, xwy)

    # softmax over the sequence axis (L fully resident in the block -> exact single pass)
    m = jnp.max(xwy, axis=-1, keepdims=True)
    e = jnp.exp(xwy - m)
    denom = jnp.sum(e, axis=-1, keepdims=True)
    inv = 1.0 / denom                          # exact divide on a (Bt, 1) vector (cheap)
    alpha = e * inv                            # (Bt, L)

    alpha_ref[...] = alpha[:, None, :]                          # (Bt, 1, L), lane-dense store
    wx_ref[...] = (alpha[:, :, None] * x).astype(wx_ref.dtype)  # (Bt, L, H1), full-width store


def bilinear_vecseq_attn(x, y, x_mask, weight, bias, *, block_b=None):
    """x: (B,L,H1), y: (B,H2), x_mask: (B,L) int (1=pad), weight: (H1,H2), bias: (H1,).

    Returns (alpha (B,L,1) f32, weighted_x (B,L,H1) in x.dtype).
    """
    B, L, H1 = x.shape

    # Hoist the tiny Linear(y_size -> x_size) out of the kernel; plain XLA handles it well.
    wy = (jnp.asarray(y, jnp.float32) @ jnp.asarray(weight, jnp.float32).T
          + jnp.asarray(bias, jnp.float32))                     # (B, H1)
    wy3 = wy.reshape(B, 1, H1)
    mask3 = x_mask.astype(jnp.int32).reshape(B, 1, L)

    if block_b is None:
        block_b = 1
        for cand in (8, 4, 2, 1):
            if B % cand == 0:
                block_b = cand
                break
    assert B % block_b == 0, "block_b must divide batch"
    grid = (B // block_b,)

    # Big tensors tiled over batch (last two dims = full array dims -> (8,128)-rule safe);
    # per-batch vectors kept as (Bt, 1, *) so the lane axis stays dense.
    x_spec = pl.BlockSpec((block_b, L, H1), lambda i: (i, 0, 0))
    wy_spec = pl.BlockSpec((block_b, 1, H1), lambda i: (i, 0, 0))
    mask_spec = pl.BlockSpec((block_b, 1, L), lambda i: (i, 0, 0))
    alpha_spec = pl.BlockSpec((block_b, 1, L), lambda i: (i, 0, 0))
    wx_spec = pl.BlockSpec((block_b, L, H1), lambda i: (i, 0, 0))

    alpha3, weighted_x = pl.pallas_call(
        _bilinear_vecseq_attn_kernel,
        out_shape=(
            jax.ShapeDtypeStruct((B, 1, L), jnp.float32),
            jax.ShapeDtypeStruct((B, L, H1), x.dtype),
        ),
        grid=grid,
        in_specs=[x_spec, wy_spec, mask_spec],
        out_specs=(alpha_spec, wx_spec),
        compiler_params=pltpu.CompilerParams(
            dimension_semantics=("parallel",),  # v7x: shard batch tiles across the 2 TCs
        ),
    )(x, wy3, mask3)

    alpha = alpha3.reshape(B, L, 1)  # match PyTorch alpha.unsqueeze(2); metadata-only reshape
    return alpha, weighted_x


if __name__ == "__main__":
    # Small shapes consistent with the module: batch=2, seq=8, x_size=32, y_size=16
    B, L, H1, H2 = 2, 8, 32, 16

    key = jax.random.PRNGKey(0)
    kx, ky, kw, kb = jax.random.split(key, 4)

    x = jax.random.normal(kx, (B, L, H1), dtype=jnp.float32)
    y = jax.random.normal(ky, (B, H2), dtype=jnp.float32)

    # Deterministic Linear(y_size, x_size) params, PyTorch-style uniform init.
    bound = 1.0 / (H2 ** 0.5)
    weight = jax.random.uniform(kw, (H1, H2), jnp.float32, -bound, bound)
    bias = jax.random.uniform(kb, (H1,), jnp.float32, -bound, bound)

    # x_mask: 1 for padding, 0 for valid. Give each batch a different valid length.
    lengths = jnp.array([L, L - 3], dtype=jnp.int32)            # (B,)
    pos = jnp.arange(L, dtype=jnp.int32)[None, :]               # (1, L)
    x_mask = (pos >= lengths[:, None]).astype(jnp.int32)        # (B, L)

    # block_b=1 so the demo actually exercises the multi-step pipelined grid.
    alpha, weighted_x = bilinear_vecseq_attn(x, y, x_mask, weight, bias, block_b=1)
    jax.block_until_ready((alpha, weighted_x))

    # Sanity check against plain-JAX reference.
    wy_ref = y @ weight.T + bias
    xwy_ref = jnp.einsum("blh,bh->bl", x, wy_ref)
    xwy_ref = jnp.where(x_mask != 0, -jnp.inf, xwy_ref)
    alpha_ref = jax.nn.softmax(xwy_ref, axis=-1)[..., None]
    wx_ref = alpha_ref * x
    assert jnp.allclose(alpha, alpha_ref, atol=1e-3, rtol=1e-3)
    assert jnp.allclose(weighted_x, wx_ref, atol=1e-3, rtol=1e-3)

    print("KERNEL_OK")
</pallas_src>

<mosaic_0001>
module attributes {stable_mosaic.version = 11 : i64} {
  func.func @_bilinear_vecseq_attn_kernel(%arg0: i32, %arg1: memref<1x8x32xf32, #tpu.memory_space<vmem>>, %arg2: memref<1x1x32xf32, #tpu.memory_space<vmem>>, %arg3: memref<1x1x8xi32, #tpu.memory_space<vmem>>, %arg4: memref<1x1x8xf32, #tpu.memory_space<vmem>>, %arg5: memref<1x8x32xf32, #tpu.memory_space<vmem>>) attributes {dimension_semantics = [#tpu.dimension_semantics<parallel>], iteration_bounds = array<i64: 2>, scalar_prefetch = 0 : i64, scratch_operands = 0 : i64, tpu.core_type = #tpu.core_type<tc>, window_params = [{transform_indices = @transform_0, window_bounds = array<i64: 1, 8, 32>}, {transform_indices = @transform_1, window_bounds = array<i64: 1, 1, 32>}, {transform_indices = @transform_2, window_bounds = array<i64: 1, 1, 8>}, {transform_indices = @transform_3, window_bounds = array<i64: 1, 1, 8>}, {transform_indices = @transform_4, window_bounds = array<i64: 1, 8, 32>}]} {
    %c0 = arith.constant 0 : index
    %c0_0 = arith.constant 0 : index
    %c0_1 = arith.constant 0 : index
    %0 = vector.load %arg1[%c0, %c0_0, %c0_1] : memref<1x8x32xf32, #tpu.memory_space<vmem>>, vector<1x8x32xf32>
    %c0_2 = arith.constant 0 : index
    %c0_3 = arith.constant 0 : index
    %c0_4 = arith.constant 0 : index
    %1 = vector.load %arg2[%c0_2, %c0_3, %c0_4] : memref<1x1x32xf32, #tpu.memory_space<vmem>>, vector<1x1x32xf32>
    %c0_5 = arith.constant 0 : index
    %c0_6 = arith.constant 0 : index
    %c0_7 = arith.constant 0 : index
    %2 = vector.load %arg3[%c0_5, %c0_6, %c0_7] : memref<1x1x8xi32, #tpu.memory_space<vmem>>, vector<1x1x8xi32>
    %3 = vector.shape_cast %2 : vector<1x1x8xi32> to vector<1x8xi32>
    %4 = vector.broadcast %1 : vector<1x1x32xf32> to vector<1x8x32xf32>
    %5 = arith.mulf %0, %4 : vector<1x8x32xf32>
    %cst = arith.constant dense<0.000000e+00> : vector<1x8xf32>
    %6 = vector.multi_reduction <add>, %5, %cst [2] : vector<1x8x32xf32> to vector<1x8xf32>
    %c0_i32 = arith.constant 0 : i32
    %7 = vector.broadcast %c0_i32 : i32 to vector<1x8xi32>
    %8 = arith.cmpi ne, %3, %7 : vector<1x8xi32>
    %cst_8 = arith.constant -1.000000e+30 : f32
    %9 = vector.broadcast %cst_8 : f32 to vector<1x8xf32>
    %10 = arith.select %8, %9, %6 : vector<1x8xi1>, vector<1x8xf32>
    %cst_9 = arith.constant dense<0xFF800000> : vector<1xf32>
    %11 = vector.multi_reduction <maximumf>, %10, %cst_9 [1] : vector<1x8xf32> to vector<1xf32>
    %12 = vector.shape_cast %11 : vector<1xf32> to vector<1x1xf32>
    %13 = vector.broadcast %12 : vector<1x1xf32> to vector<1x8xf32>
    %14 = arith.subf %10, %13 : vector<1x8xf32>
    %15 = math.exp %14 : vector<1x8xf32>
    %cst_10 = arith.constant dense<0.000000e+00> : vector<1xf32>
    %16 = vector.multi_reduction <add>, %15, %cst_10 [1] : vector<1x8xf32> to vector<1xf32>
    %17 = vector.shape_cast %16 : vector<1xf32> to vector<1x1xf32>
    %cst_11 = arith.constant 1.000000e+00 : f32
    %18 = vector.broadcast %cst_11 : f32 to vector<1x1xf32>
    %19 = arith.divf %18, %17 : vector<1x1xf32>
    %20 = vector.broadcast %19 : vector<1x1xf32> to vector<1x8xf32>
    %21 = arith.mulf %15, %20 : vector<1x8xf32>
    %22 = vector.shape_cast %21 : vector<1x8xf32> to vector<1x1x8xf32>
    %c0_12 = arith.constant 0 : index
    %c0_13 = arith.constant 0 : index
    %c0_14 = arith.constant 0 : index
    %23 = vector.load %arg4[%c0_12, %c0_13, %c0_14] : memref<1x1x8xf32, #tpu.memory_space<vmem>>, vector<1x1x8xf32>
    tpu.vector_store %arg4[%c0_12, %c0_13, %c0_14], %22 {strides = array<i32>} : memref<1x1x8xf32, #tpu.memory_space<vmem>>, vector<1x1x8xf32>,
    %24 = vector.shape_cast %21 : vector<1x8xf32> to vector<1x8x1xf32>
    %25 = vector.broadcast %24 : vector<1x8x1xf32> to vector<1x8x32xf32>
    %26 = arith.mulf %25, %0 : vector<1x8x32xf32>
    %c0_15 = arith.constant 0 : index
    %c0_16 = arith.constant 0 : index
    %c0_17 = arith.constant 0 : index
    %27 = vector.load %arg5[%c0_15, %c0_16, %c0_17] : memref<1x8x32xf32, #tpu.memory_space<vmem>>, vector<1x8x32xf32>
    tpu.vector_store %arg5[%c0_15, %c0_16, %c0_17], %26 {strides = array<i32>} : memref<1x8x32xf32, #tpu.memory_space<vmem>>, vector<1x8x32xf32>,
    return
  }
  func.func @transform_0(%arg0: i32) -> (i32, i32, i32) {
    %c0_i32 = arith.constant 0 : i32
    %c0_i32_0 = arith.constant 0 : i32
    %c0_i32_1 = arith.constant 0 : i32
    return %arg0, %c0_i32, %c0_i32_0 : i32, i32, i32
  }
  func.func @transform_1(%arg0: i32) -> (i32, i32, i32) {
    %c0_i32 = arith.constant 0 : i32
    %c0_i32_0 = arith.constant 0 : i32
    %c0_i32_1 = arith.constant 0 : i32
    return %arg0, %c0_i32, %c0_i32_0 : i32, i32, i32
  }
  func.func @transform_2(%arg0: i32) -> (i32, i32, i32) {
    %c0_i32 = arith.constant 0 : i32
    %c0_i32_0 = arith.constant 0 : i32
    %c0_i32_1 = arith.constant 0 : i32
    return %arg0, %c0_i32, %c0_i32_0 : i32, i32, i32
  }
  func.func @transform_3(%arg0: i32) -> (i32, i32, i32) {
    %c0_i32 = arith.constant 0 : i32
    %c0_i32_0 = arith.constant 0 : i32
    %c0_i32_1 = arith.constant 0 : i32
    return %arg0, %c0_i32, %c0_i32_0 : i32, i32, i32
  }
  func.func @transform_4(%arg0: i32) -> (i32, i32, i32) {
    %c0_i32 = arith.constant 0 : i32
    %c0_i32_0 = arith.constant 0 : i32
    %c0_i32_1 = arith.constant 0 : i32
    return %arg0, %c0_i32, %c0_i32_0 : i32, i32, i32
  }
}

</mosaic_0001>

<bundles_post_ra>
// kernel: tpu_custom_call.1
= control target key start
LH: loop header
LB: loop body
LE: loop exit
PB: predicated region body
PF: predicated region fallthrough
CT: control target
= control target key end

     0   :  { %10 = vsyncpa [#allocation3], 0  ;;  %s1082_s0 = inlined_call_operand.hbm [shape: f32[2,8,32], index: 0, kind: input, shape index: {}]   ;;  %s1083_s1 = inlined_call_operand.hbm [shape: f32[2,1,32], index: 1, kind: input, shape index: {}]   ;;  %s1084_s2 = inlined_call_operand.vmem [shape: s32[2,1,8], index: 2, kind: input, shape index: {}]   ;;  %s1085_s3 = inlined_call_operand.hbm [shape: f32[2,1,8], index: 3, kind: output, shape index: {0}]   ;;  %s1086_s4 = inlined_call_operand.hbm [shape: f32[2,8,32], index: 4, kind: output, shape index: {1}]  }
   0x1   :  { %12 = vsyncpa [#allocation3 + $0x1], 0 }
   0x2   :  { %13 = vsyncpa [#allocation6], 0 }
   0x3   :  { %15 = vsyncpa [#allocation6 + $0x1], 0 }
   0x4   :  { %16 = vsyncpa [#allocation4], 0 }
   0x5   :  { %18 = vsyncpa [#allocation4 + $0x1], 0 }
   0x6   :  { %19 = vsyncpa [#allocation9], 0 }
   0x7   :  { %21 = vsyncpa [#allocation9 + $0x1], 0  ;;  %s839_s15 = smov 0   ;;  %s841_s16 = smov 0  }
   0x8   :  { %s843_s17 = smov 0   ;;  %s845_s18 = smov 0  }
   0x9 LB: > { %s860_s19 = sadd.s32 4294967295, %s806_s18   ;;  %s574_s20 = sadd.s32 4294967294, %s806_s18   ;;  %s806_s18 = sphi %s845_s18, %s1105_s18   ;;  %s802_s17 = sphi %s843_s17, %s1104_s17   ;;  %s798_s16 = sphi %s841_s16, %s1103_s16   ;;  %s794_s15 = sphi %s839_s15, %s1102_s15  }
   0xa   : > { %s864_s21 = sadd.s32 1, %s806_s18   ;;  %s34_s22 = sadd.s32 1, %s802_s17 }
   0xb   : > { %s31_s23 = ssub.s32 %s806_s18, %s864_s21  ;;  %p41_p0 = scmp.ne.s32.totalorder %s802_s17, %s798_s16 }
   0xc   : > { %p32_p1 = scmp.eq.s32.totalorder %s31_s23, 0  ;;  %p42_p2 = scmp.eq.s32.totalorder %s806_s18, 0 }
   0xd   : > { %p47_p3 = scmp.ne.s32.totalorder %s798_s16, %s794_s15  ;;  %p48_p4 = scmp.eq.s32.totalorder %s860_s19, 0 }
   0xe   : > { %s876_s24 = scalar_select %p32_p1, %s802_s17, %s34_s22  }
   0xf   : > { %p878_p5 = por %p42_p2, %p41_p0  ;;  %p882_p6 = por %p48_p4, %p47_p3 }
  0x10   : > { %p123_p7 = scmp.eq.s32.totalorder %s860_s19, 1  ;;  %p129_p8 = scmp.eq.s32.totalorder %s574_s20, 1 }
  0x11   : > { %s1090_s26 = scalar_select %p882_p6, 1, 0 }
  0x12   : > { %p611_p10 = scmp.lt.s32.totalorder %s806_s18, 2  ;;  %p889_p11 = por %p123_p7, %p41_p0 }
  0x13   : > { %p893_p12 = por %p129_p8, %p47_p3  ;;  %s898_s29 = sand.u32 1, %s802_s17  }
  0x14   : > { %s1091_s27 = scalar_select %p889_p11, 1, 0 }
  0x15   : > { %s1092_s28 = scalar_select %p893_p12, 1, 0 }
  0x16   : > { %s578_s30 = sshll.u32 %s806_s18, 7  ;;  %s577_s5 = sshll.u32 %s898_s29, 3 }
  0x17   : > { %s905_s8 = scalar_lea.hbm %s1082_s0, %s578_s30  ;;  %s179_s9 = scalar_lea.vmem [#allocation2], %s577_s5 }
  0x18   : > { %s186_s10 = sshll.u32 %s179_s9, 4  ;;  %p909_p13 = pnand %p611_p10, %p878_p5  ;;  %s913_s10 = int_to_ptr.vmem [resolvable:$true] %s186_s10 }
  0x19   : > { %s176_s12 = scalar_lea.sflag [#allocation3], %s898_s29  ;;  %s652_s13 = scalar_lea.hbm %s905_s8, 128 }
  0x1a   : > { %p653_p2 = scmp.ne.s32.totalorder %s905_s8, %s652_s13  ;;  %p654_p3 = pneg %p909_p13 }
  0x1b   : > { %s657_s22 = scalar_lea.hbm %s1082_s0, 256  ;;  %p658_p5 = scmp.lt.s32.totalorder %s905_s8, %s1082_s0 }
  0x1c   : > { %p655_p4 = pnand %p654_p3, %p653_p2  ;;  %p659_p8 = scmp.lt.s32.totalorder %s657_s22, %s652_s13 }
  0x1e   : > { %p656_p7 = pneg %p655_p4  ;;  %p660_p10 = por %p659_p8, %p658_p5 }
  0x20   : > { %p661_p9 = pnand %p660_p10, %p656_p7 }
  0x22   : > { %664 = shalt.err (!%p661_p9)
}
  0x23   : > { %s665_s30 = scalar_lea.vmem %s913_s10, 128  ;;  %s808_s5 = smov [#allocation2]  }
  0x24   : > { %p666_p0 = scmp.ne.s32.totalorder %s913_s10, %s665_s30  ;;  %s670_s6 = sshll.u32 %s808_s5, 4  ;;  %s671_s6 = int_to_ptr.vmem [resolvable:$false] %s670_s6 }
  0x25   : > { %s672_s7 = scalar_lea.vmem %s671_s6, 256  ;;  %p673_p1 = scmp.lt.s32.totalorder %s913_s10, %s671_s6 }
  0x26   : > { %p668_p2 = pnand %p666_p0, %p654_p3  ;;  %p674_p12 = scmp.lt.s32.totalorder %s672_s7, %s665_s30 }
  0x28   : > { %p669_p4 = pneg %p668_p2  ;;  %p675_p11 = por %p674_p12, %p673_p1 }
  0x2a   : > { %p676_p5 = pnand %p675_p11, %p669_p4 }
  0x2c   : > { %679 = shalt.err (!%p676_p5)
}
  0x2d   : > { %600 = dma.hbm_to_vmem [thread:$0]  (!%p909_p13), %s905_s8, 128, %s913_s10, %s176_s12  }
  0x2e   : > { %p1094_p9 = scmp.lt.s32.totalorder %s806_s18, 3  ;;  %p1095_p0 = scmp.ge.s32.totalorder %s806_s18, 1 }
  0x2f   : > { %s579_s13 = sshll.u32 %s806_s18, 4  ;;  %s196_s23 = scalar_lea.vmem [#allocation5], %s898_s29 }
  0x30   : > { %p946_p7 = pnand %p1095_p0, %p1094_p9  ;;  %s954_s22 = scalar_lea.hbm %s1083_s1, %s579_s13 }
  0x31   : > { %s203_s25 = sshll.u32 %s196_s23, 4  ;;  %s194_s30 = scalar_lea.sflag [#allocation6], %s898_s29  ;;  %s204_s25 = int_to_ptr.vmem [resolvable:$true] %s203_s25 }
  0x32   : > { %s1096_s9 = scalar_select %p946_p7, 1, 0 }
  0x33   : > { %s680_s8 = scalar_lea.hbm %s954_s22, 16  ;;  %s685_s5 = scalar_lea.hbm %s1083_s1, 32 }
  0x34   : > { %p681_p11 = scmp.ne.s32.totalorder %s954_s22, %s680_s8  ;;  %p686_p8 = scmp.lt.s32.totalorder %s954_s22, %s1083_s1 }
  0x35   : > { %p687_p10 = scmp.lt.s32.totalorder %s685_s5, %s680_s8 }
  0x36   : > { %p683_p12 = pnand %p681_p11, %p654_p3 }
  0x37   : > { %p688_p2 = por %p687_p10, %p686_p8 }
  0x38   : > { %p684_p1 = pneg %p683_p12 }
  0x3a   : > { %p689_p4 = pnand %p688_p2, %p684_p1 }
  0x3c   : > { %692 = shalt.err (!%p689_p4)
}
  0x3d   : > { %s693_s13 = scalar_lea.vmem %s204_s25, 16  ;;  %s809_s29 = smov [#allocation5]  }
  0x3e   : > { %p694_p5 = scmp.ne.s32.totalorder %s204_s25, %s693_s13  ;;  %s698_s14 = sshll.u32 %s809_s29, 4  ;;  %s699_s14 = int_to_ptr.vmem [resolvable:$false] %s698_s14 }
  0x3f   : > { %s700_s20 = scalar_lea.vmem %s699_s14, 32  ;;  %p701_p11 = scmp.lt.s32.totalorder %s204_s25, %s699_s14 }
  0x40   : > { %p696_p9 = pnand %p694_p5, %p654_p3  ;;  %p702_p12 = scmp.lt.s32.totalorder %s700_s20, %s693_s13 }
  0x42   : > { %p697_p0 = pneg %p696_p9  ;;  %p703_p6 = por %p702_p12, %p701_p11 }
  0x44   : > { %p704_p7 = pnand %p703_p6, %p697_p0 }
  0x46   : > { %707 = shalt.err (!%p704_p7)
}
  0x47   : > { %603 = dma.hbm_to_vmem [thread:$0]  (!%p909_p13), %s954_s22, 16, %s204_s25, %s194_s30  }
  0x48   : > { %p1097_p1 = scmp.ne.s32.totalorder %s1096_s9, 0 }
  0x49   : > { %s979_s23 = sand.u32 (!%p1097_p1), 1, %s798_s16   ;;  %p1098_p6 = scmp.ne.s32.totalorder (!%p1097_p1), %s1090_s26, 0 }
  0x4a   : > { %218 = sbr.rel (%p1097_p1) target bundleno = 823 (0x337), region = 32  ;;  %s581_s8 = sshll.u32 (!%p1097_p1), %s979_s23, 3 }
  0x4b   : > { %s221_s10 = scalar_lea.sflag (!%p1097_p1), [#allocation3], %s979_s23  ;;  %s224_s12 = scalar_lea.vmem (!%p1097_p1), [#allocation2], %s581_s8 }
  0x4f   : > { %777 = dma.done.wait (%p1098_p6), %s221_s10, 128  }
  0x50   : > { %779 = vsyncadd (%p1098_p6), %s221_s10, 4294967168  ;;  %s230_s11 = scalar_lea.sflag [#allocation6], %s979_s23  ;;  %s232_s9 = scalar_lea.vmem [#allocation5], %s979_s23 }
  0x51   : > { %781 = dma.done.wait (%p1098_p6), %s230_s11, 16  }
  0x52   : > { %783 = vsyncadd (%p1098_p6), %s230_s11, 4294967280  ;;  %v995_v0 = vld [vmem:[%s224_s12] sm:$0xff]  ;;  %vm281_vm0 = vcmask 261120   ;;  %v810_v4 = vmov 0   ;;  %v287_v5 = vlaneseq  ;;  %v811_v9 = vmov 1966171168  }
  0x53   : > { %v583_v1 = vld [vmem:[%s232_s9] ss:$0 sm:$0xff]  ;;  %647 = vset.pattern.permute.xlu0 %v810_v4  ;;  %v324_v10 = vunpack.c.l.s4 %v811_v9  ;;  %p268_p13 = scmp.lt.s32.totalorder %s860_s19, 1  ;;  %vm393_vm2 = vcmask 57344   ;;  %s585_s5 = sshll.u32 %s860_s19, 4 }
  0x54   : > { %v280_v2 = vmul.f32 %v583_v1, %v995_v0  ;;  %v999_v6 = vshrl.u32 %v287_v5, 7  ;;  %v372_v7 = vand.u32 127, %v287_v5  ;;  %s260_s6 = scalar_lea.vmem [#allocation7], %s979_s23  ;;  %s1023_s14 = scalar_lea.hbm %s1085_s3, %s585_s5 }
  0x55   : > { %v325_v11 = vunpack.c.0.s8 %v324_v10  ;;  %s269_s26 = scalar_select %p268_p13, %s860_s19, 1 }
  0x56   : > { %v282_v3 = vsel %vm281_vm0, %v280_v2, 0.0  ;;  %v375_v8 = vsub.s32 %v372_v7, %v999_v6  ;;  %v289_v12 = vsub.s32 0, %v999_v6  ;;  %v293_v13 = vsub.s32 1, %v999_v6  ;;  %s434_s7 = sshll.u32 %s260_s6, 4  ;;  %s417_s20 = scalar_lea.sflag [#allocation4], %s979_s23  ;;  %s435_s7 = int_to_ptr.vmem [resolvable:$true] %s434_s7 }
  0x57   : > { %283 = vadd.xlane.f32.xlu0 %v282_v3  ;;  %v297_v14 = vsub.s32 2, %v999_v6  ;;  %v301_v15 = vsub.s32 3, %v999_v6  ;;  %v305_v16 = vsub.s32 4, %v999_v6  ;;  %v309_v17 = vsub.s32 5, %v999_v6  ;;  %s270_s30 = scalar_lea.vmem %s1084_s2, %s269_s26  ;;  %s708_s10 = scalar_lea.vmem %s435_s7, 16 }
  0x58   : > { %v313_v18 = vsub.s32 6, %v999_v6  ;;  %v317_v19 = vsub.s32 7, %v999_v6  ;;  %v328_v21 = vsub.s32 %v325_v11, %v999_v6  ;;  %v273_v45 = vld [vmem:[%s270_s30] sm:$0x1]  ;;  %p709_p3 = scmp.ne.s32.totalorder %s435_s7, %s708_s10  ;;  %p1099_p7 = scmp.ne.s32.totalorder %s1091_s27, 0 }
  0x59   : > { %vm285_vm1 = vcmp.ne.s32.totalorder %v273_v45, 0  ;;  %s812_s12 = smov [#allocation7]  }
  0x5a   : > { %p710_p8 = pnand %p709_p3, %p1099_p7  ;;  %s712_s11 = sshll.u32 %s812_s12, 4  ;;  %s713_s11 = int_to_ptr.vmem [resolvable:$false] %s712_s11 }
  0x5b   : > { %s714_s9 = scalar_lea.vmem %s713_s11, 32  ;;  %p715_p2 = scmp.lt.s32.totalorder %s435_s7, %s713_s11 }
  0x5c   : > { %p711_p10 = pneg %p710_p8  ;;  %p716_p4 = scmp.lt.s32.totalorder %s714_s9, %s708_s10 }
  0x5e   : > { %p717_p5 = por %p716_p4, %p715_p2 }
  0x60   : > { %p718_p9 = pnand %p717_p5, %p711_p10 }
  0xe0   : > { %v284_v20 = vpop.xlane.xlu0 %283 }
  0xe1   : > { %v290_v22 = vrot.slane %v284_v20, %v289_v12  ;;  %v294_v23 = vrot.slane %v284_v20, %v293_v13  ;;  %v298_v24 = vrot.slane %v284_v20, %v297_v14  ;;  %v302_v25 = vrot.slane %v284_v20, %v301_v15 }
  0xe2   : > { %v306_v26 = vrot.slane %v284_v20, %v305_v16  ;;  %v310_v27 = vrot.slane %v284_v20, %v309_v17  ;;  %v314_v28 = vrot.slane %v284_v20, %v313_v18  ;;  %v318_v29 = vrot.slane %v284_v20, %v317_v19 }
  0xe3   : > { %v319_v30 = vcombine.low %v290_v22, %v294_v23  ;;  %v320_v31 = vcombine.low %v298_v24, %v302_v25 }
  0xe4   : > { %v321_v32 = vcombine.low %v306_v26, %v310_v27  ;;  %v322_v33 = vcombine.low %v314_v28, %v318_v29 }
  0xe5   : > { %v329_v34 = vrot.slane %v319_v30, %v328_v21  ;;  %v336_v35 = vrot.slane %v320_v31, %v328_v21 }
  0xe6   : > { %v343_v36 = vrot.slane %v321_v32, %v328_v21  ;;  %v350_v37 = vrot.slane %v322_v33, %v328_v21 }
  0xe7   : > { %v351_v38 = vcombine.low %v329_v34, %v336_v35 }
  0xe8   : > { %v352_v39 = vcombine.low %v343_v36, %v350_v37 }
  0xe9   : > { %v359_v40 = vrot.slane %v351_v38, %v328_v21 }
  0xea   : > { %v366_v41 = vrot.slane %v352_v39, %v328_v21 }
  0xec   : > { %v367_v42 = vcombine.low %v359_v40, %v366_v41 }
  0xee   : > { %369 = vperm.xlu0 %647, %v367_v42  }
 0x169   : > { %v370_v43 = vpop.permute.xlu0 %369 }
 0x16a   : > { %v376_v44 = vrot.slane %v370_v43, %v375_v8 }
 0x16c   : > { %v383_v46 = vrot.slane %v376_v44, %v328_v21 }
 0x16e   : > { %v390_v47 = vrot.slane %v383_v46, %v328_v21 }
 0x170   : > { %v392_v48 = vsel %vm285_vm1, -1e+30, %v390_v47 }
 0x171   : > { %v394_v49 = vsel %vm393_vm2, %v392_v48, -inf }
 0x172   : > { %395 = vmax.xlane.f32.xlu1 %v394_v49 }
 0x1fb   : > { %v396_v50 = vpop.xlane.xlu1 %395 }
 0x1fc   : > { %v397_v51 = vsub.f32 %v392_v48, %v396_v50 }
 0x1fe   : > { %v398_v52 = vmul.f32 1.442695, %v397_v51 }
 0x200   : > { %648 = vpow2.f32 %v398_v52 }
 0x20d   : > { %v649_v53 = vpop.eup %648 }
 0x20e   : > { %v400_v54 = vsel %vm393_vm2, %v649_v53, 0.0 }
 0x20f   : > { %401 = vadd.xlane.f32.xlu1 %v400_v54 }
 0x298   : > { %v402_v55 = vpop.xlane.xlu1 %401 }
 0x299   : > { %650 = vrcp.f32 %v402_v55 }
 0x2a6   : > { %v651_v56 = vpop.eup %650 }
 0x2a7   : > { %v405_v57 = vmul.f32 %v651_v56, %v649_v53 }
 0x2a9   : > { %v410_v58 = vrot.slane %v405_v57, %v289_v12  ;;  %406 = vst.msk [vmem:[%s260_s6] sm:$0x1] %vm393_vm2, %v405_v57 }
 0x2aa   : > { %721 = shalt.err (!%p718_p9)
}
 0x2ab   : > { %s722_s26 = scalar_lea.hbm %s1023_s14, 16  ;;  %s726_s30 = scalar_lea.hbm %s1085_s3, 32 }
 0x2ac   : > { %p723_p0 = scmp.ne.s32.totalorder %s1023_s14, %s722_s26  ;;  %p727_p1 = scmp.lt.s32.totalorder %s1023_s14, %s1085_s3 }
 0x2ad   : > { %p728_p6 = scmp.lt.s32.totalorder %s726_s30, %s722_s26 }
 0x2ae   : > { %p724_p11 = pnand %p723_p0, %p1099_p7 }
 0x2af   : > { %p729_p13 = por %p728_p6, %p727_p1 }
 0x2b0   : > { %p725_p12 = pneg %p724_p11 }
 0x2b2   : > { %p730_p3 = pnand %p729_p13, %p725_p12 }
 0x2b4   : > { %733 = shalt.err (!%p730_p3)
}
 0x2b5   : > { %593 = dma.vmem_to_hbm [thread:$0]  (%p1099_p7), %s435_s7, 16, %s1023_s14, %s417_s20   ;;  %412 = vbcast.lane.b32.xlu1 %v410_v58, 256 }
 0x2b6   : > { %s586_s13 = sshll.u32 %s860_s19, 7  ;;  %s267_s29 = scalar_lea.vmem [#allocation8], %s581_s8 }
 0x2b7   : > { %s447_s10 = sshll.u32 %s267_s29, 4  ;;  %s445_s9 = scalar_lea.hbm %s1086_s4, %s586_s13  ;;  %s448_s10 = int_to_ptr.vmem [resolvable:$true] %s447_s10 }
 0x2b8   : > { %s421_s26 = scalar_lea.sflag [#allocation9], %s979_s23  ;;  %s734_s22 = scalar_lea.vmem %s448_s10, 128 }
 0x2b9   : > { %p735_p8 = scmp.ne.s32.totalorder %s448_s10, %s734_s22  ;;  %s813_s19 = smov [#allocation8]  }
 0x2ba   : > { %s738_s7 = sshll.u32 %s813_s19, 4  ;;  %s739_s7 = int_to_ptr.vmem [resolvable:$false] %s738_s7 }
 0x2bb   : > { %p736_p10 = pnand %p735_p8, %p1099_p7  ;;  %s740_s8 = scalar_lea.vmem %s739_s7, 256 }
 0x2bc   : > { %p741_p4 = scmp.lt.s32.totalorder %s448_s10, %s739_s7  ;;  %p742_p5 = scmp.lt.s32.totalorder %s740_s8, %s734_s22 }
 0x2bd   : > { %p737_p2 = pneg %p736_p10 }
 0x2be   : > { %p743_p9 = por %p742_p5, %p741_p4 }
 0x2c0   : > { %p744_p0 = pnand %p743_p9, %p737_p2 }
 0x327   : > { %v413_v59 = vpop.permute.xlu1 %412 }
 0x328   : > { %v414_v60 = vmul.f32 %v413_v59, %v995_v0 }
 0x32a   : > { %415 = vst.msk [vmem:[%s267_s29] sm:$0xff] %vm281_vm0, %v414_v60 }
 0x32b   : > { %747 = shalt.err (!%p744_p0)
}
 0x32c   : > { %s748_s14 = scalar_lea.hbm %s445_s9, 128  ;;  %s752_s25 = scalar_lea.hbm %s1086_s4, 256 }
 0x32d   : > { %p749_p11 = scmp.ne.s32.totalorder %s445_s9, %s748_s14  ;;  %p753_p6 = scmp.lt.s32.totalorder %s445_s9, %s1086_s4 }
 0x32e   : > { %p754_p13 = scmp.lt.s32.totalorder %s752_s25, %s748_s14 }
 0x32f   : > { %p750_p12 = pnand %p749_p11, %p1099_p7 }
 0x330   : > { %p755_p3 = por %p754_p13, %p753_p6 }
 0x331   : > { %p751_p1 = pneg %p750_p12 }
 0x333   : > { %p756_p8 = pnand %p755_p3, %p751_p1 }
 0x335   : > { %759 = shalt.err (!%p756_p8)
}
 0x336   : > { %594 = dma.vmem_to_hbm [thread:$0]  (%p1099_p7), %s448_s10, 128, %s445_s9, %s421_s26  }
 0x337 PF: > { %s459_s6 = sand.u32 1, %s794_s15   ;;  %p1100_p10 = scmp.ne.s32.totalorder %s1092_s28, 0 }
 0x338   : > { %p1101_p2 = scmp.ge.s32.totalorder %s806_s18, 2  ;;  %s460_s13 = scalar_lea.sflag [#allocation4], %s459_s6 }
 0x33a   : > { %p605_p4 = pnand %p1101_p2, %p1100_p10 }
 0x33c   : > { %p606_p5 = pneg %p605_p4 }
 0x33e   : > { %785 = dma.done.wait (%p606_p5), %s460_s13, 16  }
 0x33f   : > { %787 = vsyncadd (%p606_p5), %s460_s13, 4294967280  ;;  %s468_s29 = scalar_lea.sflag [#allocation9], %s459_s6 }
 0x340   : > { %789 = dma.done.wait (%p606_p5), %s468_s29, 128  }
 0x341   : > { %791 = vsyncadd (%p606_p5), %s468_s29, 4294967168  ;;  %p24_p7 = scmp.ge.s32.totalorder %s864_s21, 4   ;;  %s1102_s15 = smov %s798_s16 }
 0x342   : > { %s1103_s16 = smov %s802_s17  ;;  %s1104_s17 = smov %s876_s24 }
 0x343   : > { %s1105_s18 = smov %s864_s21  ;;  %26 = sbr.rel (!%p24_p7) target bundleno = 9 (0x9), region = 110 }
 0x348   :  { %473 = vsyncpa [#allocation3], 1 }
 0x349   :  { %475 = vsyncpa [#allocation3 + $0x1], 1 }
 0x34a   :  { %476 = vsyncpa [#allocation6], 1 }
 0x34b   :  { %478 = vsyncpa [#allocation6 + $0x1], 1 }
 0x34c   :  { %479 = vsyncpa [#allocation4], 1 }
 0x34d   :  { %481 = vsyncpa [#allocation4 + $0x1], 1 }
 0x34e   :  { %482 = vsyncpa [#allocation9], 1 }
 0x34f   :  { %484 = vsyncpa [#allocation9 + $0x1], 1 }

</bundles_post_ra>
